<compile_context>
chip_gen: v7x
topology: tpu7x:2x2x1
jax: 0.10.0
libtpu: 0.0.40
codegen_flags: <defaults>
</compile_context>

<pallas_src>
import functools

import jax
import jax.numpy as jnp
import numpy as np
from jax.experimental import pallas as pl
from jax.experimental.pallas import tpu as pltpu


# --------------------------------------------------------------------------
# tiling helpers / constants
# --------------------------------------------------------------------------
_ROW_TILE = 256           # rows per block for the fused row-tiled kernels
_MM_TILE_M = 512          # plain linear tiles (review: amortize per-step overhead)
_MM_TILE_N = 512
_MM_TILE_K = 1024
_HID_TILE = 512           # MLP hidden-dim chunk
_ATTN_TILE = 128          # q / kv tile for flash attention
_MSE_TILE = 512
_VMEM_LIMIT = 64 * 1024 * 1024   # <= v7x physical VMEM; raises v5e/v6e scoped default
_NEG_INF = -1e30


def _round_up(x, m):
    return ((x + m - 1) // m) * m


def _tile(dim, target):
    """Whole dim if small (full-dim blocks are always legal); otherwise an aligned
    `target` tile with the dim padded up to a multiple of it."""
    if dim <= target:
        return dim, dim
    return target, _round_up(dim, target)


def _pad_rows(x, rows):
    return x if x.shape[0] == rows else jnp.pad(x, ((0, rows - x.shape[0]), (0, 0)))


def _layernorm_f32(x, g, b):
    mean = jnp.mean(x, axis=-1, keepdims=True)
    c = x - mean
    var = jnp.mean(c * c, axis=-1, keepdims=True)
    return (c * jax.lax.rsqrt(var + 1e-5)) * g + b


@functools.lru_cache(maxsize=None)
def _buffered_one_supported():
    """Feature-probe: can constant weight blocks be single-buffered
    (pipeline_mode=pl.Buffered(1))?  Falls back to default double-buffering."""
    if not hasattr(pl, "Buffered"):
        return False

    def _copy(x_ref, o_ref):
        o_ref[...] = x_ref[...]

    try:
        spec = pl.BlockSpec((8, 128), lambda i: (0, 0), pipeline_mode=pl.Buffered(1))
        fn = pl.pallas_call(
            _copy,
            out_shape=jax.ShapeDtypeStruct((8, 128), jnp.float32),
            grid=(1,),
            in_specs=[spec],
            out_specs=pl.BlockSpec((8, 128), lambda i: (0, 0)),
        )
        jax.jit(fn).lower(jnp.zeros((8, 128), jnp.float32)).compile()
        return True
    except Exception:   # any failure -> keep default buffering
        return False


def _const_block_spec(block_shape, index_map):
    """BlockSpec for a block whose index never changes across the grid: request
    single buffering so it doesn't pay 2x VMEM for pointless double-buffering."""
    if _buffered_one_supported():
        return pl.BlockSpec(block_shape, index_map, pipeline_mode=pl.Buffered(1))
    return pl.BlockSpec(block_shape, index_map)


# --------------------------------------------------------------------------
# Pallas kernels
# --------------------------------------------------------------------------
def _linear_kernel(x_ref, w_ref, b_ref, o_ref, acc_ref):
    """Tiled y = x @ w + b. x/w are bf16, accumulation in f32."""
    @pl.when(pl.program_id(2) == 0)
    def _init():
        acc_ref[...] = jnp.zeros_like(acc_ref)

    acc_ref[...] += jnp.dot(x_ref[...], w_ref[...],
                            preferred_element_type=jnp.float32)

    @pl.when(pl.program_id(2) == pl.num_programs(2) - 1)
    def _done():
        o_ref[...] = (acc_ref[...] + b_ref[...]).astype(o_ref.dtype)


def _ln_qkv_kernel(x_ref, g_ref, b_ref, w_ref, o_ref):
    """Fused LayerNorm (f32) + QKV projection (bf16 MXU), no bias (qkv_bias=False)."""
    y = _layernorm_f32(x_ref[...].astype(jnp.float32), g_ref[...], b_ref[...])
    o_ref[...] = jnp.dot(y.astype(jnp.bfloat16), w_ref[...],
                         preferred_element_type=jnp.float32).astype(o_ref.dtype)


def _flash_attn_kernel(q_ref, k_ref, v_ref, o_ref, m_sc, l_sc, acc_sc, *,
                       scale, seq_len, kv_tile, need_mask):
    """Head-major flash attention: one (batch*head, q-tile) per output block,
    online softmax over kv tiles (innermost "arbitrary" grid axis)."""
    kv_i = pl.program_id(2)

    @pl.when(kv_i == 0)
    def _init():
        m_sc[...] = jnp.full_like(m_sc, _NEG_INF)
        l_sc[...] = jnp.zeros_like(l_sc)
        acc_sc[...] = jnp.zeros_like(acc_sc)

    # scores in f32; scale applied to the f32 scores (exact wrt the reference)
    s = jax.lax.dot_general(q_ref[...], k_ref[...], (((1,), (1,)), ((), ())),
                            preferred_element_type=jnp.float32) * scale
    if need_mask:
        kv_pos = kv_i * kv_tile + jax.lax.broadcasted_iota(jnp.int32, s.shape, 1)
        s = jnp.where(kv_pos < seq_len, s, _NEG_INF)

    m_new = jnp.maximum(m_sc[...], jnp.max(s, axis=-1, keepdims=True))
    alpha = jnp.exp(m_sc[...] - m_new)
    p = jnp.exp(s - m_new)
    l_sc[...] = alpha * l_sc[...] + jnp.sum(p, axis=-1, keepdims=True)
    acc_sc[...] = alpha * acc_sc[...] + jnp.dot(
        p.astype(jnp.bfloat16), v_ref[...], preferred_element_type=jnp.float32)
    m_sc[...] = m_new

    @pl.when(kv_i == pl.num_programs(2) - 1)
    def _done():
        o_ref[...] = (acc_sc[...] *
                      pl.reciprocal(l_sc[...], approx=True)).astype(o_ref.dtype)


def _proj_res_kernel(a_ref, w_ref, b_ref, x_ref, o_ref):
    """Fused attention output projection + bias + residual add (bf16 stream)."""
    y = jnp.dot(a_ref[...], w_ref[...], preferred_element_type=jnp.float32)
    o_ref[...] = (x_ref[...].astype(jnp.float32) + y + b_ref[...]).astype(o_ref.dtype)


def _ln_mlp_res_kernel(x_ref, g_ref, b_ref, w1_ref, b1_ref, w2_ref, b2_ref, o_ref,
                       y_sc, acc_sc):
    """Fused LayerNorm + fc1 + GELU + fc2 + residual, chunked over the hidden dim.

    Grid axis 1 walks hidden-dim chunks: LN(x) is computed once (h==0) into a
    bf16 scratch, each chunk contributes a partial fc2 product into the f32
    accumulator, and the residual add + store happen on the last chunk.
    """
    h_i = pl.program_id(1)

    @pl.when(h_i == 0)
    def _init():
        y = _layernorm_f32(x_ref[...].astype(jnp.float32), g_ref[...], b_ref[...])
        y_sc[...] = y.astype(jnp.bfloat16)
        acc_sc[...] = jnp.zeros_like(acc_sc)

    h = jnp.dot(y_sc[...], w1_ref[...],
                preferred_element_type=jnp.float32) + b1_ref[...]
    # TODO(synk): tanh-approximate GELU inside the fused kernel (exact erf-GELU kept
    # out of Mosaic); ~3e-3 max abs deviation, within the bf16-matmul tolerance.
    h = jax.nn.gelu(h, approximate=True)
    acc_sc[...] += jnp.dot(h.astype(jnp.bfloat16), w2_ref[...],
                           preferred_element_type=jnp.float32)

    @pl.when(h_i == pl.num_programs(1) - 1)
    def _done():
        o_ref[...] = (x_ref[...].astype(jnp.float32) + acc_sc[...]
                      + b2_ref[...]).astype(o_ref.dtype)


def _mse_kernel(a_ref, b_ref, o_ref, acc_ref, *, inv_count):
    """Row-tiled squared error with a lane-wide (1, D) partial accumulator; the
    single cross-lane reduction + normalization happen on the last grid step."""
    @pl.when(pl.program_id(0) == 0)
    def _init():
        acc_ref[...] = jnp.zeros_like(acc_ref)

    d = a_ref[...] - b_ref[...]
    acc_ref[...] += jnp.sum(d * d, axis=0, keepdims=True)          # VPU partials

    @pl.when(pl.program_id(0) == pl.num_programs(0) - 1)
    def _done():
        o_ref[...] = jnp.sum(acc_ref[...], axis=-1, keepdims=True) * inv_count


# --------------------------------------------------------------------------
# Kernel wrappers
# --------------------------------------------------------------------------
def linear(x, w, b):
    """Tiled y = x @ w + b over arbitrary leading dims (bf16 MXU, f32 accumulate)."""
    orig = x.shape
    K = orig[-1]
    M = int(np.prod(orig[:-1]))
    N = w.shape[1]

    tm, Mp = _tile(M, _MM_TILE_M)
    tn, Np = _tile(N, _MM_TILE_N)
    tk, Kp = _tile(K, _MM_TILE_K)

    x2 = x.reshape(M, K).astype(jnp.bfloat16)
    w2 = w.astype(jnp.bfloat16)
    b2 = b.reshape(1, N).astype(jnp.float32)
    if (Mp, Kp) != (M, K):
        x2 = jnp.pad(x2, ((0, Mp - M), (0, Kp - K)))
    if (Kp, Np) != (K, N):
        w2 = jnp.pad(w2, ((0, Kp - K), (0, Np - N)))
    if Np != N:
        b2 = jnp.pad(b2, ((0, 0), (0, Np - N)))

    out = pl.pallas_call(
        _linear_kernel,
        out_shape=jax.ShapeDtypeStruct((Mp, Np), jnp.float32),
        grid=(Mp // tm, Np // tn, Kp // tk),
        in_specs=[
            pl.BlockSpec((tm, tk), lambda i, j, k: (i, k)),
            pl.BlockSpec((tk, tn), lambda i, j, k: (k, j)),
            pl.BlockSpec((1, tn), lambda i, j, k: (0, j)),
        ],
        out_specs=pl.BlockSpec((tm, tn), lambda i, j, k: (i, j)),
        scratch_shapes=[pltpu.VMEM((tm, tn), jnp.float32)],
        compiler_params=pltpu.CompilerParams(
            dimension_semantics=("parallel", "parallel", "arbitrary"),
            vmem_limit_bytes=_VMEM_LIMIT),
    )(x2, w2, b2)
    return out[:M, :N].reshape(*orig[:-1], N)


def ln_qkv(x, g, b, w_qkv):
    """LayerNorm + QKV projection fused; x is bf16, returns (B, S, 3*inner) bf16."""
    B, S, D = x.shape
    M = B * S
    N = w_qkv.shape[1]
    tm, Mp = _tile(M, _ROW_TILE)
    x2 = _pad_rows(x.reshape(M, D).astype(jnp.bfloat16), Mp)

    out = pl.pallas_call(
        _ln_qkv_kernel,
        out_shape=jax.ShapeDtypeStruct((Mp, N), jnp.bfloat16),
        grid=(Mp // tm,),
        in_specs=[
            pl.BlockSpec((tm, D), lambda i: (i, 0)),
            pl.BlockSpec((1, D), lambda i: (0, 0)),
            pl.BlockSpec((1, D), lambda i: (0, 0)),
            _const_block_spec((D, N), lambda i: (0, 0)),   # resident weight, 1 buffer
        ],
        out_specs=pl.BlockSpec((tm, N), lambda i: (i, 0)),
        compiler_params=pltpu.CompilerParams(
            dimension_semantics=("parallel",),
            vmem_limit_bytes=_VMEM_LIMIT),
    )(x2, g.reshape(1, D).astype(jnp.float32), b.reshape(1, D).astype(jnp.float32),
      w_qkv.astype(jnp.bfloat16))
    return out[:M].reshape(B, S, N)


def attention(qkv, heads, dim_head, scale):
    """qkv: (B, S, 3*inner) bf16 -> (B, S, inner) bf16.

    Head-major flash attention: heads become part of the grid (B*heads), the
    head dim is padded to a lane-dense 128 multiple, and the softmax runs online
    over kv tiles so VMEM per step is a few tiles regardless of S."""
    B, S, _ = qkv.shape
    inner = heads * dim_head

    # head-major split (JAX glue): (B, S, 3, H, Dh) -> 3 x (B*H, S, Dh)
    qkv_h = qkv.reshape(B, S, 3, heads, dim_head).transpose(2, 0, 3, 1, 4)
    q = qkv_h[0].reshape(B * heads, S, dim_head)
    k = qkv_h[1].reshape(B * heads, S, dim_head)
    v = qkv_h[2].reshape(B * heads, S, dim_head)

    dhp = _round_up(dim_head, 128)                 # lane-dense output slab
    ts = min(_ATTN_TILE, _round_up(S, 8))          # q / kv tile
    sp = _round_up(S, ts)

    def pad3(t):
        return jnp.pad(t, ((0, 0), (0, sp - S), (0, dhp - dim_head)))

    q, k, v = pad3(q), pad3(k), pad3(v)

    kern = functools.partial(_flash_attn_kernel, scale=scale, seq_len=S,
                             kv_tile=ts, need_mask=(sp != S))
    out = pl.pallas_call(
        kern,
        out_shape=jax.ShapeDtypeStruct((B * heads, sp, dhp), jnp.bfloat16),
        grid=(B * heads, sp // ts, sp // ts),
        in_specs=[
            pl.BlockSpec((None, ts, dhp), lambda b, qi, ki: (b, qi, 0)),
            pl.BlockSpec((None, ts, dhp), lambda b, qi, ki: (b, ki, 0)),
            pl.BlockSpec((None, ts, dhp), lambda b, qi, ki: (b, ki, 0)),
        ],
        out_specs=pl.BlockSpec((None, ts, dhp), lambda b, qi, ki: (b, qi, 0)),
        scratch_shapes=[pltpu.VMEM((ts, 1), jnp.float32),
                        pltpu.VMEM((ts, 1), jnp.float32),
                        pltpu.VMEM((ts, dhp), jnp.float32)],
        compiler_params=pltpu.CompilerParams(
            dimension_semantics=("parallel", "parallel", "arbitrary"),
            vmem_limit_bytes=_VMEM_LIMIT),
    )(q, k, v)

    out = out[:, :S, :dim_head].reshape(B, heads, S, dim_head)
    return out.transpose(0, 2, 1, 3).reshape(B, S, inner)


def proj_residual(a, w, b, x):
    """x + a @ w + b, fused (attention output projection + residual), bf16 stream."""
    B, S, inner = a.shape
    D = x.shape[-1]
    M = B * S
    tm, Mp = _tile(M, _ROW_TILE)
    a2 = _pad_rows(a.reshape(M, inner), Mp)
    x2 = _pad_rows(x.reshape(M, D).astype(jnp.bfloat16), Mp)

    out = pl.pallas_call(
        _proj_res_kernel,
        out_shape=jax.ShapeDtypeStruct((Mp, D), jnp.bfloat16),
        grid=(Mp // tm,),
        in_specs=[
            pl.BlockSpec((tm, inner), lambda i: (i, 0)),
            _const_block_spec((inner, D), lambda i: (0, 0)),   # resident weight
            pl.BlockSpec((1, D), lambda i: (0, 0)),
            pl.BlockSpec((tm, D), lambda i: (i, 0)),
        ],
        out_specs=pl.BlockSpec((tm, D), lambda i: (i, 0)),
        compiler_params=pltpu.CompilerParams(
            dimension_semantics=("parallel",),
            vmem_limit_bytes=_VMEM_LIMIT),
    )(a2, w.astype(jnp.bfloat16), b.reshape(1, D).astype(jnp.float32), x2)
    return out[:M].reshape(B, S, D)


def ln_mlp_residual(x, g, b, w1, b1, w2, b2):
    """x + fc2(GELU(fc1(LN(x)))), fused and chunked over the MLP hidden dim."""
    B, S, D = x.shape
    H = w1.shape[1]
    M = B * S
    tm, Mp = _tile(M, _ROW_TILE)
    th, Hp = _tile(H, _HID_TILE)

    x2 = _pad_rows(x.reshape(M, D).astype(jnp.bfloat16), Mp)
    w1p = w1.astype(jnp.bfloat16)
    b1p = b1.reshape(1, H).astype(jnp.float32)
    w2p = w2.astype(jnp.bfloat16)
    if Hp != H:
        w1p = jnp.pad(w1p, ((0, 0), (0, Hp - H)))
        b1p = jnp.pad(b1p, ((0, 0), (0, Hp - H)))
        w2p = jnp.pad(w2p, ((0, Hp - H), (0, 0)))

    out = pl.pallas_call(
        _ln_mlp_res_kernel,
        out_shape=jax.ShapeDtypeStruct((Mp, D), jnp.bfloat16),
        grid=(Mp // tm, Hp // th),
        in_specs=[
            pl.BlockSpec((tm, D), lambda i, h: (i, 0)),
            pl.BlockSpec((1, D), lambda i, h: (0, 0)),
            pl.BlockSpec((1, D), lambda i, h: (0, 0)),
            pl.BlockSpec((D, th), lambda i, h: (0, h)),       # fc1 weight chunk
            pl.BlockSpec((1, th), lambda i, h: (0, h)),
            pl.BlockSpec((th, D), lambda i, h: (h, 0)),       # fc2 weight chunk
            pl.BlockSpec((1, D), lambda i, h: (0, 0)),
        ],
        out_specs=pl.BlockSpec((tm, D), lambda i, h: (i, 0)),
        scratch_shapes=[pltpu.VMEM((tm, D), jnp.bfloat16),    # LN(x) cached once
                        pltpu.VMEM((tm, D), jnp.float32)],    # fc2 accumulator
        compiler_params=pltpu.CompilerParams(
            dimension_semantics=("parallel", "arbitrary"),
            vmem_limit_bytes=_VMEM_LIMIT),
    )(x2, g.reshape(1, D).astype(jnp.float32), b.reshape(1, D).astype(jnp.float32),
      w1p, b1p, w2p, b2.reshape(1, D).astype(jnp.float32))
    return out[:M].reshape(B, S, D)


def mse_loss(a, b):
    D = a.shape[-1]
    M = int(a.size // D)
    tm, Mp = _tile(M, _MSE_TILE)
    a2 = _pad_rows(a.reshape(M, D).astype(jnp.float32), Mp)
    b2 = _pad_rows(b.reshape(M, D).astype(jnp.float32), Mp)
    kern = functools.partial(_mse_kernel, inv_count=1.0 / float(M * D))
    out = pl.pallas_call(
        kern,
        out_shape=jax.ShapeDtypeStruct((1, 1), jnp.float32),
        grid=(Mp // tm,),
        in_specs=[pl.BlockSpec((tm, D), lambda i: (i, 0))] * 2,
        out_specs=pl.BlockSpec((1, 1), lambda i: (0, 0)),
        scratch_shapes=[pltpu.VMEM((1, D), jnp.float32)],
        compiler_params=pltpu.CompilerParams(
            dimension_semantics=("arbitrary",),
            vmem_limit_bytes=_VMEM_LIMIT),
    )(a2, b2)
    return out[0, 0]


# --------------------------------------------------------------------------
# Model building blocks (glue around the kernels)
# --------------------------------------------------------------------------
def abs_time_encoding(x, times, tokens_per_time):
    """Sinusoidal absolute-time encoding, repeated over the tokens of each time step.
    TODO(synk): dropout of AbsTimeEncoding omitted (inference / eval-mode identity)."""
    B, N, D = x.shape
    half = D // 2
    div = jnp.exp(jnp.arange(half, dtype=jnp.float32) * (-2.0 * jnp.log(10000.0) / D))
    ang = times[:, :, None].astype(jnp.float32) * div[None, None, :]   # (B, T, D/2)
    pe = jnp.zeros((B, times.shape[1], D), jnp.float32)
    pe = pe.at[:, :, 0::2].set(jnp.sin(ang))
    pe = pe.at[:, :, 1::2].set(jnp.cos(ang))
    pe = jnp.repeat(pe, tokens_per_time, axis=1)                       # (B, T*tokens, D)
    return x + pe


def transformer_forward(x, layers, heads, dim_head):
    """Pre-norm Transformer: fused [LN+QKV] -> flash attention -> [proj+res] ->
    [LN+MLP(chunked)+res]. The residual stream lives in bf16 in HBM."""
    scale = dim_head ** -0.5
    x = x.astype(jnp.bfloat16)
    for lp in layers:
        qkv = ln_qkv(x, lp["ln1_g"], lp["ln1_b"], lp["w_qkv"])      # (B, S, 3*inner) bf16
        a = attention(qkv, heads, dim_head, scale)                  # (B, S, inner)   bf16
        x = proj_residual(a, lp["w_o"], lp["b_o"], x)               # (B, S, D)       bf16
        x = ln_mlp_residual(x, lp["ln2_g"], lp["ln2_b"],
                            lp["w1"], lp["b1"], lp["w2"], lp["b2"])  # (B, S, D)      bf16
    return x


def mae_forward(params, img, times, mask_key, cfg):
    B, T, C, H, W = img.shape
    p = cfg["patch"]
    ph, pw = H // p, W // p
    P = ph * pw
    patch_dim = C * p * p
    num_masked = cfg["num_masked"]
    num_unmasked = P - num_masked

    # to_patch: 'b t c (h p1) (w p2) -> b t (h w) (p1 p2 c)'
    patches = img.reshape(B, T, C, ph, p, pw, p)
    patches = patches.transpose(0, 1, 3, 5, 4, 6, 2).reshape(B, T, P, patch_dim)

    # patch_to_emb (Linear) + encoder positional embedding
    tokens = linear(patches, params["patch_to_emb_w"], params["patch_to_emb_b"])
    tokens = tokens + params["enc_pe"][None, None]                   # (B, T, P, De)

    # random masking (torch.rand(...).argsort equivalent)
    rand = jax.random.uniform(mask_key, (B, T, P))
    rand_indices = jnp.argsort(rand, axis=-1)
    masked_indices = rand_indices[:, :, :num_masked]
    unmasked_indices = rand_indices[:, :, num_masked:]

    tokens = jnp.take_along_axis(tokens, unmasked_indices[..., None], axis=2)
    masked_patches = jnp.take_along_axis(patches, masked_indices[..., None], axis=2)

    # default (ViT-style) encoder branch
    tokens = tokens.reshape(B, T * num_unmasked, cfg["enc_dim"])
    tokens = abs_time_encoding(tokens, times, num_unmasked)
    encoded = transformer_forward(
        tokens, params["enc_layers"], cfg["enc_heads"], cfg["enc_dim_head"])

    # enc_to_dec is Identity (encoder_dim == decoder_dim)
    decoder_tokens = encoded
    unmasked_pe = jnp.take(params["dec_pos_emb"], unmasked_indices, axis=0)
    decoder_tokens = decoder_tokens + unmasked_pe.reshape(B, T * num_unmasked, cfg["dec_dim"])
    decoder_tokens = abs_time_encoding(decoder_tokens, times, num_unmasked)

    mask_tokens = jnp.broadcast_to(
        params["mask_token"][None, None], (B, T * num_masked, cfg["dec_dim"]))
    masked_pe = jnp.take(params["dec_pos_emb"], masked_indices, axis=0)
    mask_tokens = mask_tokens + masked_pe.reshape(B, T * num_masked, cfg["dec_dim"])
    mask_tokens = abs_time_encoding(mask_tokens, times, num_masked)

    dec_in = jnp.concatenate([mask_tokens, decoder_tokens], axis=1)   # (B, T*P, Dd)
    decoded = transformer_forward(
        dec_in, params["dec_layers"], cfg["dec_heads"], cfg["dec_dim_head"])

    mask_out = decoded[:, : num_masked * T]
    pred = linear(mask_out, params["to_pixels_w"], params["to_pixels_b"])
    pred = pred.reshape(B, T, num_masked, patch_dim)

    return mse_loss(pred, masked_patches)


# --------------------------------------------------------------------------
# Deterministic parameter init (shapes from MAE.__init__)
# --------------------------------------------------------------------------
def init_params(key, cfg):
    keys = iter(jax.random.split(key, 32))

    def nrm(shape, scale=0.02):
        return (scale * jax.random.normal(next(keys), shape)).astype(jnp.float32)

    enc_dim, dec_dim = cfg["enc_dim"], cfg["dec_dim"]
    patch_dim, P = cfg["patch_dim"], cfg["num_patches"]

    params = {}
    params["patch_to_emb_w"] = nrm((patch_dim, enc_dim))
    params["patch_to_emb_b"] = jnp.zeros((enc_dim,), jnp.float32)
    params["enc_pe"] = nrm((P, enc_dim), 1.0)            # encoder.pos_embedding.pe
    params["mask_token"] = nrm((dec_dim,), 1.0)
    params["dec_pos_emb"] = params["enc_pe"]             # copied (enc_dim == dec_dim)
    params["to_pixels_w"] = nrm((dec_dim, patch_dim))
    params["to_pixels_b"] = jnp.zeros((patch_dim,), jnp.float32)

    def make_layers(depth, dim, heads, dim_head, mlp_dim):
        inner = heads * dim_head
        layers = []
        for _ in range(depth):
            layers.append(
                dict(
                    ln1_g=jnp.ones((dim,), jnp.float32),
                    ln1_b=jnp.zeros((dim,), jnp.float32),
                    w_qkv=nrm((dim, 3 * inner)),
                    w_o=nrm((inner, dim)),
                    b_o=jnp.zeros((dim,), jnp.float32),
                    ln2_g=jnp.ones((dim,), jnp.float32),
                    ln2_b=jnp.zeros((dim,), jnp.float32),
                    w1=nrm((dim, mlp_dim)),
                    b1=jnp.zeros((mlp_dim,), jnp.float32),
                    w2=nrm((mlp_dim, dim)),
                    b2=jnp.zeros((dim,), jnp.float32),
                )
            )
        return layers

    params["enc_layers"] = make_layers(
        cfg["enc_depth"], enc_dim, cfg["enc_heads"], cfg["enc_dim_head"], enc_dim * 4)
    params["dec_layers"] = make_layers(
        cfg["dec_depth"], dec_dim, cfg["dec_heads"], cfg["dec_dim_head"], dec_dim * 4)
    return params


# --------------------------------------------------------------------------
if __name__ == "__main__":
    # Small config consistent with the module:
    #   patch 8x8 over 16x16x1 frames -> 4 patches/frame, patch_dim=64
    #   encoder_dim == decoder_dim == 32, masking_ratio=0.6 -> num_masked = int(0.6*4) = 2
    #   decoder_depth=1, decoder_heads=8, decoder_dim_head=64
    cfg = dict(
        patch=8, num_patches=4, patch_dim=64,
        enc_dim=32, dec_dim=32, num_masked=2,
        enc_depth=1, enc_heads=4, enc_dim_head=16,
        dec_depth=1, dec_heads=8, dec_dim_head=64,
    )

    key = jax.random.PRNGKey(0)
    k_param, k_img, k_times, k_mask = jax.random.split(key, 4)
    params = init_params(k_param, cfg)

    B, T, C, H, W = 2, 2, 1, 16, 16
    img = jax.random.normal(k_img, (B, T, C, H, W), jnp.float32)
    times = jnp.sort(10.0 * jax.random.uniform(k_times, (B, T), jnp.float32), axis=-1)

    loss = mae_forward(params, img, times, k_mask, cfg)
    loss = jax.block_until_ready(loss)
    assert loss.shape == () and bool(jnp.isfinite(loss))
    print("KERNEL_OK")
</pallas_src>

<mosaic_0001>
module attributes {stable_mosaic.version = 11 : i64} {
  func.func @_linear_kernel(%arg0: i32, %arg1: i32, %arg2: i32, %arg3: memref<16x64xbf16, #tpu.memory_space<vmem>>, %arg4: memref<64x32xbf16, #tpu.memory_space<vmem>>, %arg5: memref<1x32xf32, #tpu.memory_space<vmem>>, %arg6: memref<16x32xf32, #tpu.memory_space<vmem>>, %arg7: memref<16x32xf32, #tpu.memory_space<vmem>>) attributes {dimension_semantics = [#tpu.dimension_semantics<parallel>, #tpu.dimension_semantics<parallel>, #tpu.dimension_semantics<arbitrary>], iteration_bounds = array<i64: 1, 1, 1>, scalar_prefetch = 0 : i64, scratch_operands = 1 : i64, tpu.core_type = #tpu.core_type<tc>, window_params = [{transform_indices = @transform_0, window_bounds = array<i64: 16, 64>}, {transform_indices = @transform_1, window_bounds = array<i64: 64, 32>}, {transform_indices = @transform_2, window_bounds = array<i64: 1, 32>}, {transform_indices = @transform_3, window_bounds = array<i64: 16, 32>}]} {
    %c0_i32 = arith.constant 0 : i32
    %0 = arith.cmpi eq, %arg2, %c0_i32 : i32
    %1 = arith.extui %0 : i1 to i32
    %c0_i32_0 = arith.constant 0 : i32
    %2 = arith.cmpi ne, %1, %c0_i32_0 : i32
    scf.if %2 {
      %cst_10 = arith.constant 0.000000e+00 : f32
      %12 = vector.broadcast %cst_10 : f32 to vector<16x32xf32>
      %c0_11 = arith.constant 0 : index
      %c0_12 = arith.constant 0 : index
      %13 = vector.load %arg7[%c0_11, %c0_12] : memref<16x32xf32, #tpu.memory_space<vmem>>, vector<16x32xf32>
      tpu.vector_store %arg7[%c0_11, %c0_12], %12 {strides = array<i32>} : memref<16x32xf32, #tpu.memory_space<vmem>>, vector<16x32xf32>,
    } else {
    }
    %c0 = arith.constant 0 : index
    %c0_1 = arith.constant 0 : index
    %3 = vector.load %arg7[%c0, %c0_1] : memref<16x32xf32, #tpu.memory_space<vmem>>, vector<16x32xf32>
    %c0_2 = arith.constant 0 : index
    %c0_3 = arith.constant 0 : index
    %4 = vector.load %arg3[%c0_2, %c0_3] : memref<16x64xbf16, #tpu.memory_space<vmem>>, vector<16x64xbf16>
    %c0_4 = arith.constant 0 : index
    %c0_5 = arith.constant 0 : index
    %5 = vector.load %arg4[%c0_4, %c0_5] : memref<64x32xbf16, #tpu.memory_space<vmem>>, vector<64x32xbf16>
    %cst = arith.constant dense<0.000000e+00> : vector<16x32xf32>
    %6 = tpu.matmul %4, %5, %cst {dimension_numbers = #tpu.dot_dimension_numbers<[1], [0], [0], [1], [0, 0, 1, 1], [], []>} : vector<16x64xbf16>, vector<64x32xbf16>, vector<16x32xf32> -> vector<16x32xf32>
    %7 = arith.addf %3, %6 : vector<16x32xf32>
    %c0_6 = arith.constant 0 : index
    %c0_7 = arith.constant 0 : index
    %8 = vector.load %arg7[%c0_6, %c0_7] : memref<16x32xf32, #tpu.memory_space<vmem>>, vector<16x32xf32>
    tpu.vector_store %arg7[%c0_6, %c0_7], %7 {strides = array<i32>} : memref<16x32xf32, #tpu.memory_space<vmem>>, vector<16x32xf32>,
    %c0_i32_8 = arith.constant 0 : i32
    %9 = arith.cmpi eq, %arg2, %c0_i32_8 : i32
    %10 = arith.extui %9 : i1 to i32
    %c0_i32_9 = arith.constant 0 : i32
    %11 = arith.cmpi ne, %10, %c0_i32_9 : i32
    scf.if %11 {
      %c0_10 = arith.constant 0 : index
      %c0_11 = arith.constant 0 : index
      %12 = vector.load %arg7[%c0_10, %c0_11] : memref<16x32xf32, #tpu.memory_space<vmem>>, vector<16x32xf32>
      %c0_12 = arith.constant 0 : index
      %c0_13 = arith.constant 0 : index
      %13 = vector.load %arg5[%c0_12, %c0_13] : memref<1x32xf32, #tpu.memory_space<vmem>>, vector<1x32xf32>
      %14 = vector.broadcast %13 : vector<1x32xf32> to vector<16x32xf32>
      %15 = arith.addf %12, %14 : vector<16x32xf32>
      %c0_14 = arith.constant 0 : index
      %c0_15 = arith.constant 0 : index
      %16 = vector.load %arg6[%c0_14, %c0_15] : memref<16x32xf32, #tpu.memory_space<vmem>>, vector<16x32xf32>
      tpu.vector_store %arg6[%c0_14, %c0_15], %15 {strides = array<i32>} : memref<16x32xf32, #tpu.memory_space<vmem>>, vector<16x32xf32>,
    } else {
    }
    return
  }
  func.func @transform_0(%arg0: i32, %arg1: i32, %arg2: i32) -> (i32, i32) {
    %c0_i32 = arith.constant 0 : i32
    return %arg0, %arg2 : i32, i32
  }
  func.func @transform_1(%arg0: i32, %arg1: i32, %arg2: i32) -> (i32, i32) {
    %c0_i32 = arith.constant 0 : i32
    return %arg2, %arg1 : i32, i32
  }
  func.func @transform_2(%arg0: i32, %arg1: i32, %arg2: i32) -> (i32, i32) {
    %c0_i32 = arith.constant 0 : i32
    %c0_i32_0 = arith.constant 0 : i32
    return %c0_i32, %arg1 : i32, i32
  }
  func.func @transform_3(%arg0: i32, %arg1: i32, %arg2: i32) -> (i32, i32) {
    %c0_i32 = arith.constant 0 : i32
    return %arg0, %arg1 : i32, i32
  }
}

</mosaic_0001>

<bundles_post_ra>
// kernel: tpu_custom_call.1
= control target key start
LH: loop header
LB: loop body
LE: loop exit
PB: predicated region body
PF: predicated region fallthrough
CT: control target
= control target key end

     0   :  { %8 = vsyncpa [#allocation4], 0  ;;  %s411_s0 = inlined_call_operand.hbm [shape: bf16[16,64], index: 0, kind: input, shape index: {}]   ;;  %s412_s1 = inlined_call_operand.hbm [shape: bf16[64,32], index: 1, kind: input, shape index: {}]   ;;  %s413_s2 = inlined_call_operand.hbm [shape: f32[1,32], index: 2, kind: input, shape index: {}]   ;;  %s414_s3 = inlined_call_operand.hbm [shape: f32[16,32], index: 3, kind: output, shape index: {}]  }
   0x1   :  { %9 = vsyncpa [#allocation7], 0 }
   0x2   :  { %10 = vsyncpa [#allocation5], 0  ;;  %s320_s12 = smov [#allocation6]   ;;  %s321_s14 = smov [#allocation3]  }
   0x3   :  { %s28_s13 = sshll.u32 %s320_s12, 4  ;;  %s16_s15 = sshll.u32 %s321_s14, 4  ;;  %s29_s13 = int_to_ptr.vmem [resolvable:$true] %s28_s13  ;;  %s350_s15 = int_to_ptr.vmem [resolvable:$true] %s16_s15 }
   0x4   :  { %s226_s18 = scalar_lea.hbm %s412_s1, 512 }
   0x5   :  { %p227_p0 = scmp.ne.s32.totalorder %s412_s1, %s226_s18  ;;  %p230_p1 = scmp.lt.u32.totalorder %s226_s18, %s412_s1 }
   0x7   :  { %p232_p2 = pnand %p230_p1, %p227_p0 }
   0x9   :  { %235 = shalt.err (!%p232_p2)
}
   0xa   :  { %s236_s23 = scalar_lea.vmem %s29_s13, 512  ;;  %p241_p4 = scmp.lt.s32.totalorder %s29_s13, %s29_s13 }
   0xb   :  { %p237_p3 = scmp.ne.s32.totalorder %s29_s13, %s236_s23  ;;  %p242_p5 = scmp.lt.s32.totalorder %s236_s23, %s236_s23 }
   0xd   :  { %p243_p6 = por %p242_p5, %p241_p4 }
   0xf   :  { %p244_p7 = pnand %p243_p6, %p237_p3 }
  0x11   :  { %247 = shalt.err (!%p244_p7)
}
  0x12   :  { %s322_s24 = smov 64   ;;  %s323_s25 = smov 4  }
  0x13   :  { %34 = dma.hbm_to_vmem [thread:$0]  %s412_s1, 512, %s29_s13, [#allocation7], %s322_s24, %s322_s24, %s323_s25  }
  0x14   :  { %s248_s30 = scalar_lea.hbm %s411_s0, 128 }
  0x15   :  { %p249_p8 = scmp.ne.s32.totalorder %s411_s0, %s248_s30  ;;  %p252_p9 = scmp.lt.u32.totalorder %s248_s30, %s411_s0 }
  0x17   :  { %p254_p10 = pnand %p252_p9, %p249_p8 }
  0x19   :  { %257 = shalt.err (!%p254_p10)
}
  0x1a   :  { %s258_s8 = scalar_lea.vmem %s350_s15, 128  ;;  %p263_p12 = scmp.lt.s32.totalorder %s350_s15, %s350_s15 }
  0x1b   :  { %p259_p11 = scmp.ne.s32.totalorder %s350_s15, %s258_s8  ;;  %p264_p13 = scmp.lt.s32.totalorder %s258_s8, %s258_s8 }
  0x1d   :  { %p265_p0 = por %p264_p13, %p263_p12 }
  0x1f   :  { %p266_p1 = pnand %p265_p0, %p259_p11 }
  0x21   :  { %269 = shalt.err (!%p266_p1)
}
  0x22   :  { %22 = dma.hbm_to_vmem [thread:$0]  %s411_s0, 128, %s350_s15, [#allocation4], %s322_s24, %s322_s24, %s323_s25  }
  0x23   :  { %s324_s10 = smov [#allocation8]   ;;  %s270_s14 = scalar_lea.hbm %s413_s2, 16 }
  0x24   :  { %s41_s11 = sshll.u32 %s324_s10, 4  ;;  %p271_p2 = scmp.ne.s32.totalorder %s413_s2, %s270_s14  ;;  %s42_s11 = int_to_ptr.vmem [resolvable:$true] %s41_s11 }
  0x25   :  { %p274_p3 = scmp.lt.u32.totalorder %s270_s14, %s413_s2 }
  0x27   :  { %p276_p4 = pnand %p274_p3, %p271_p2 }
  0x29   :  { %279 = shalt.err (!%p276_p4)
}
  0x2a   :  { %s280_s20 = scalar_lea.vmem %s42_s11, 16  ;;  %s284_s0 = scalar_lea.vmem %s42_s11, 32 }
  0x2b   :  { %p281_p5 = scmp.ne.s32.totalorder %s42_s11, %s280_s20  ;;  %p285_p6 = scmp.lt.s32.totalorder %s42_s11, %s42_s11 }
  0x2c   :  { %p286_p7 = scmp.lt.s32.totalorder %s284_s0, %s280_s20 }
  0x2e   :  { %p287_p8 = por %p286_p7, %p285_p6 }
  0x30   :  { %p288_p9 = pnand %p287_p8, %p281_p5 }
  0x32   :  { %291 = shalt.err (!%p288_p9)
}
  0x33   :  { %44 = dma.hbm_to_vmem [thread:$0]  %s413_s2, 16, %s42_s11, [#allocation7]  }
  0x34   :  { %314 = dma.done.wait [#allocation4], 128  }
  0x35   :  { %315 = vsyncadd [#allocation4], 4294967168 }
  0x36   :  { %316 = dma.done.wait [#allocation7], 528  }
  0x37   :  { %317 = vsyncadd [#allocation7], 4294966768  ;;  %vm59_vm0 = vcmask 261120   ;;  %v325_v0 = vmov 0.0   ;;  %vm326_vm1 = vmmov 0   ;;  %v221_v1 = vld [vmem:[#allocation6] sm:$0xff]  }
  0x38   :  { %199 = vmatprep.subr.bf16.mxu0 %v325_v0  ;;  %207 = vmatprep.mubr.msk.bf16.mxu0 %vm326_vm1, %v325_v0  ;;  %60 = vst.msk [vmem:[#allocation2] sm:$0xff] %vm59_vm0, %v325_v0  ;;  %61 = vst.msk [vmem:[#allocation2 + $0x8] sm:$0xff] %vm59_vm0, %v325_v0  ;;  %v222_v2 = vld [vmem:[#allocation6 + $0x8] sm:$0xff]   ;;  %v223_v3 = vld [vmem:[#allocation6 + $0x10] sm:$0xff]   ;;  %vm103_vm2 = vcmask 523264   ;;  %s327_s2 = smov [#allocation9]  }
  0x39   :  { %200 = vmatpush3.bf16.msra.mxu0 %v221_v1  ;;  %v224_v4 = vld [vmem:[#allocation6 + $0x18] sm:$0xff]   ;;  %v193_v14 = vld [vmem:[#allocation8] ss:$0 sm:$0xff]  ;;  %s174_s22 = sshll.u32 %s327_s2, 4  ;;  %s175_s22 = int_to_ptr.vmem [resolvable:$true] %s174_s22 }
  0x3a   :  { %201 = vmatprep.subr.bf16.mxu0 %v325_v0  ;;  %v225_v5 = vld [vmem:[#allocation3] sm:$0xff]   ;;  %s292_s23 = scalar_lea.vmem %s175_s22, 256  ;;  %p297_p11 = scmp.lt.s32.totalorder %s175_s22, %s175_s22 }
  0x3b   :  { %p293_p10 = scmp.ne.s32.totalorder %s175_s22, %s292_s23  ;;  %p298_p12 = scmp.lt.s32.totalorder %s292_s23, %s292_s23 }
  0x3d   :  { %202 = vmatpush3.bf16.msra.mxu0 %v222_v2  ;;  %p299_p13 = por %p298_p12, %p297_p11 }
  0x3e   :  { %203 = vmatprep.subr.bf16.mxu0 %v325_v0 }
  0x3f   :  { %v62_v6 = vld [vmem:[#allocation2] sm:$0xff]  ;;  %v63_v8 = vld [vmem:[#allocation2 + $0x8] sm:$0xff]  ;;  %p300_p0 = pnand %p299_p13, %p293_p10 }
  0x41   :  { %204 = vmatpush3.bf16.msra.mxu0 %v223_v3 }
  0x42   :  { %205 = vmatprep.subr.bf16.mxu0 %v325_v0 }
  0x45   :  { %206 = vmatpush3.bf16.msra.mxu0 %v224_v4 }
  0x48   :  { %208 = vmatmul.mubr.msk.bf16.vlgmr.msra.gmra.mrb[0].mxu0 %vm103_vm2, %v225_v5 }
 0x11b   :  { %v141_v7 = vpop.f32.mrb[0].mxu0 }
 0x11c   :  { %v148_v9 = vadd.f32 %v141_v7, %v62_v6  ;;  %v209_v10 = vpop.f32.mrb[1].mxu0 }
 0x11d   :  { %v144_v11 = vpop.f32.mrb[2].mxu0 }
 0x11e   :  { %151 = vst.msk [vmem:[#allocation2] sm:$0xff] %vm59_vm0, %v148_v9  ;;  %v149_v12 = vadd.f32 %v144_v11, %v63_v8  ;;  %v210_v13 = vpop.f32.mrb[3].mxu0 }
 0x120   :  { %152 = vst.msk [vmem:[#allocation2 + $0x8] sm:$0xff] %vm59_vm0, %v149_v12 }
 0x125   :  { %v156_v15 = vld [vmem:[#allocation2] sm:$0xff] }
 0x126   :  { %v165_v16 = vadd.f32 %v193_v14, %v156_v15 }
 0x127   :  { %v157_v17 = vld [vmem:[#allocation2 + $0x8] sm:$0xff] }
 0x128   :  { %v166_v18 = vadd.f32 %v193_v14, %v157_v17  ;;  %167 = vst.msk [vmem:[#allocation9] sm:$0xff] %vm59_vm0, %v165_v16 }
 0x12a   :  { %168 = vst.msk [vmem:[#allocation9 + $0x8] sm:$0xff] %vm59_vm0, %v166_v18 }
 0x12b   :  { %303 = shalt.err (!%p300_p0)
}
 0x12c   :  { %s304_s26 = scalar_lea.hbm %s414_s3, 256 }
 0x12d   :  { %p305_p1 = scmp.ne.s32.totalorder %s414_s3, %s304_s26  ;;  %p308_p2 = scmp.lt.u32.totalorder %s304_s26, %s414_s3 }
 0x12f   :  { %p310_p3 = pnand %p308_p2, %p305_p1 }
 0x131   :  { %313 = shalt.err (!%p310_p3)
}
 0x132   :  { %s328_s4 = smov 128   ;;  %s329_s5 = smov 8  }
 0x133   :  { %180 = dma.vmem_to_hbm [thread:$0]  %s175_s22, 256, %s414_s3, [#allocation5], %s328_s4, %s328_s4, %s329_s5  }
 0x134   :  { %318 = dma.done.wait [#allocation5], 256  }
 0x135   :  { %319 = vsyncadd [#allocation5], 4294967040 }
 0x136   :  { %184 = vsyncpa [#allocation4], 1 }
 0x137   :  { %185 = vsyncpa [#allocation7], 1 }
 0x138   :  { %186 = vsyncpa [#allocation5], 1 }

</bundles_post_ra>
